<compile_context>
chip_gen: v7x
topology: tpu7x:2x2x1
jax: 0.10.0
libtpu: 0.0.40
codegen_flags: <defaults>
</compile_context>

<pallas_src>
import functools

import jax
import jax.numpy as jnp
from jax.experimental import pallas as pl
from jax.experimental.pallas import tpu as pltpu


def _cdiv(a, b):
    return (a + b - 1) // b


def _round_up(x, m):
    return ((x + m - 1) // m) * m


def _row_align(in_dtype, out_dtype):
    """Native packed-sublane row granularity for the I/O dtypes."""
    def gran(dt):
        return {4: 8, 2: 16, 1: 32}.get(jnp.dtype(dt).itemsize, 8)
    return max(gran(in_dtype), gran(out_dtype))


def _vmem_budgets():
    """(tile_budget_bytes, vmem_limit_bytes), generation-aware."""
    cap = None
    try:
        cap = int(pltpu.get_tpu_info().vmem_capacity_bytes)
    except Exception:  # API / backend variance: fall back to the safe choice
        cap = None
    if cap is None or cap <= 64 * 1024 * 1024:
        # v7x: 64 MiB physical VMEM per TensorCore -> stay conservative.
        return 12 * 1024 * 1024, 32 * 1024 * 1024
    # v5e / v6e: 128 MiB VMEM.  Bigger tiles buy <1% past ~512 rows anyway.
    return 24 * 1024 * 1024, 48 * 1024 * 1024


def _choose_row_tile(rows, vocab, in_dtype, out_dtype, tile_budget):
    """Largest aligned row tile whose total VMEM footprint fits the budget."""
    align = _row_align(in_dtype, out_dtype)
    in_b = jnp.dtype(in_dtype).itemsize
    out_b = jnp.dtype(out_dtype).itemsize
    # Double-buffered input + output tiles, plus ~8 B/elem of in-kernel f32
    # temporaries (x.astype(f32) and e = exp(x - m)).
    bytes_per_row = 2 * vocab * (in_b + out_b) + 8 * vocab
    row_tile = (tile_budget // bytes_per_row) // align * align
    row_tile = int(max(align, min(row_tile, 1024, _round_up(rows, align))))

    # Keep the grid at >= ~8 steps on bigger inputs so both v7x TensorCores
    # stay fed and the pipeline prologue/epilogue DMAs are hidden.
    target_steps = 8
    if rows >= target_steps * align:
        per_step = _round_up(_cdiv(rows, target_steps), align)
        row_tile = max(align, min(row_tile, per_step))

    # Prefer an even grid length (odd grids leave one v7x core idle a tile).
    steps = _cdiv(rows, row_tile)
    if steps > 1 and steps % 2 == 1:
        row_tile = max(align, _round_up(_cdiv(rows, steps + 1), align))
    return row_tile


def _softmax_kernel(x_ref, probs_ref, *, inv_temperature):
    # x_ref / probs_ref: (row_tile, V) tile, V on lanes.  Compute in f32.
    x = x_ref[...].astype(jnp.float32)
    if inv_temperature is not None:          # static: folded out at T == 1.0
        x = x * inv_temperature
    m = jnp.max(x, axis=-1, keepdims=True)   # row max (stable softmax)
    e = jnp.exp(x - m)
    s = jnp.sum(e, axis=-1, keepdims=True)
    # Exact reciprocal: keeps sum(probs) == 1 tight for Categorical sampling;
    # the kernel is HBM-bound so the approx EUP path buys nothing here.
    probs_ref[...] = (e * pl.reciprocal(s, approx=False)).astype(probs_ref.dtype)


def softmax_categorical_head(logits, temperature=1.0, top_k=0, top_p=1.0,
                             repetition_penalty=1.0, *, out_dtype=None,
                             row_tile=None):
    """Categorical probabilities softmax(logits / temperature, axis=-1).

    logits: (B, S, V).  Equivalent to
    torch.distributions.Categorical(logits=logits / temperature).probs for the
    module defaults top_k=0, top_p=1.0, repetition_penalty=1.0.  Output dtype
    defaults to logits.dtype (bf16 in -> bf16 out; the bf16 probs sum to 1
    only within bf16 rounding — pass out_dtype=jnp.float32 if tighter
    normalization is needed).  Compute is f32 in-kernel.
    """
    assert top_k == 0 and top_p == 1.0, "top-k/top-p filtering not implemented"
    assert repetition_penalty == 1.0, "repetition penalty not implemented"

    B, S, V = logits.shape
    assert V % 128 == 0, "vocab dim must be a multiple of 128 lanes"
    out_dtype = logits.dtype if out_dtype is None else jnp.dtype(out_dtype)

    rows = B * S
    x2d = logits.reshape(rows, V)

    tile_budget, vmem_limit = _vmem_budgets()
    if row_tile is None:
        row_tile = _choose_row_tile(rows, V, logits.dtype, out_dtype,
                                    tile_budget)

    # No row padding: grid = cdiv(rows, row_tile); the partial last block is
    # masked by Pallas (softmax is per-row, so the garbage rows computed in
    # the masked region never reach HBM).
    grid = (_cdiv(rows, row_tile),)

    inv_temperature = None if temperature == 1.0 else float(1.0 / temperature)
    kernel = functools.partial(_softmax_kernel, inv_temperature=inv_temperature)

    probs2d = pl.pallas_call(
        kernel,
        out_shape=jax.ShapeDtypeStruct((rows, V), out_dtype),
        grid_spec=pltpu.PrefetchScalarGridSpec(
            num_scalar_prefetch=0,
            grid=grid,
            in_specs=[pl.BlockSpec((row_tile, V), lambda i: (i, 0))],
            out_specs=pl.BlockSpec((row_tile, V), lambda i: (i, 0)),
        ),
        compiler_params=pltpu.CompilerParams(
            dimension_semantics=("parallel",),
            vmem_limit_bytes=vmem_limit),
    )(x2d)

    return probs2d.reshape(B, S, V)


if __name__ == "__main__":
    key = jax.random.PRNGKey(0)

    # --- test 1: f32, shapes implied by the forward (batch, seq, vocab) -----
    B, S, V = 2, 8, 128
    k1, k2 = jax.random.split(key)
    logits = jax.random.normal(k1, (B, S, V), dtype=jnp.float32)

    temperature = 1.0
    probs = softmax_categorical_head(logits, temperature=temperature)
    probs = jax.block_until_ready(probs)

    ref = jax.nn.softmax(logits / temperature, axis=-1)
    assert probs.shape == (B, S, V)
    assert probs.dtype == logits.dtype
    assert jnp.allclose(probs, ref, atol=1e-5, rtol=1e-5)
    assert jnp.allclose(jnp.sum(probs, axis=-1), 1.0, atol=1e-5)

    # --- test 2: bf16 I/O, non-multiple-of-tile row count, T != 1 -----------
    # Exercises the masked partial-last-block path (no padding, no slicing).
    B2, S2, V2 = 2, 5, 256
    logits_bf16 = jax.random.normal(k2, (B2, S2, V2), dtype=jnp.float32) * 3.0
    logits_bf16 = logits_bf16.astype(jnp.bfloat16)
    t2 = 0.7
    probs2 = softmax_categorical_head(logits_bf16, temperature=t2)
    probs2 = jax.block_until_ready(probs2)

    ref2 = jax.nn.softmax(logits_bf16.astype(jnp.float32) / t2, axis=-1)
    assert probs2.shape == (B2, S2, V2)
    assert probs2.dtype == jnp.bfloat16
    assert jnp.allclose(probs2.astype(jnp.float32), ref2, atol=1e-2, rtol=1e-2)
    assert jnp.allclose(jnp.sum(probs2.astype(jnp.float32), axis=-1), 1.0,
                        atol=1e-2)

    # --- test 3: larger row count exercising the multi-step (even) grid -----
    B3, S3, V3 = 4, 33, 384
    logits3 = jax.random.normal(k1, (B3, S3, V3), dtype=jnp.float32)
    probs3 = jax.block_until_ready(
        softmax_categorical_head(logits3, temperature=1.0, row_tile=16))
    ref3 = jax.nn.softmax(logits3, axis=-1)
    assert jnp.allclose(probs3, ref3, atol=1e-5, rtol=1e-5)

    print("KERNEL_OK")
</pallas_src>

<mosaic_0001>
module attributes {stable_mosaic.version = 11 : i64} {
  func.func @_softmax_kernel(%arg0: i32, %arg1: memref<16x128xf32, #tpu.memory_space<vmem>>, %arg2: memref<16x128xf32, #tpu.memory_space<vmem>>) attributes {dimension_semantics = [#tpu.dimension_semantics<parallel>], iteration_bounds = array<i64: 1>, scalar_prefetch = 0 : i64, scratch_operands = 0 : i64, tpu.core_type = #tpu.core_type<tc>, window_params = [{transform_indices = @transform_0, window_bounds = array<i64: 16, 128>}, {transform_indices = @transform_1, window_bounds = array<i64: 16, 128>}]} {
    %c0 = arith.constant 0 : index
    %c0_0 = arith.constant 0 : index
    %0 = vector.load %arg1[%c0, %c0_0] : memref<16x128xf32, #tpu.memory_space<vmem>>, vector<16x128xf32>
    %cst = arith.constant dense<0xFF800000> : vector<16xf32>
    %1 = vector.multi_reduction <maximumf>, %0, %cst [1] : vector<16x128xf32> to vector<16xf32>
    %2 = vector.shape_cast %1 : vector<16xf32> to vector<16x1xf32>
    %3 = vector.broadcast %2 : vector<16x1xf32> to vector<16x128xf32>
    %4 = arith.subf %0, %3 : vector<16x128xf32>
    %5 = math.exp %4 : vector<16x128xf32>
    %cst_1 = arith.constant dense<0.000000e+00> : vector<16xf32>
    %6 = vector.multi_reduction <add>, %5, %cst_1 [1] : vector<16x128xf32> to vector<16xf32>
    %7 = vector.shape_cast %6 : vector<16xf32> to vector<16x1xf32>
    %8 = tpu.reciprocal %7 : vector<16x1xf32> -> vector<16x1xf32>
    %9 = vector.broadcast %8 : vector<16x1xf32> to vector<16x128xf32>
    %10 = arith.mulf %5, %9 : vector<16x128xf32>
    %c0_2 = arith.constant 0 : index
    %c0_3 = arith.constant 0 : index
    %11 = vector.load %arg2[%c0_2, %c0_3] : memref<16x128xf32, #tpu.memory_space<vmem>>, vector<16x128xf32>
    tpu.vector_store %arg2[%c0_2, %c0_3], %10 {strides = array<i32>} : memref<16x128xf32, #tpu.memory_space<vmem>>, vector<16x128xf32>,
    return
  }
  func.func @transform_0(%arg0: i32) -> (i32, i32) {
    %c0_i32 = arith.constant 0 : i32
    %c0_i32_0 = arith.constant 0 : i32
    return %arg0, %c0_i32 : i32, i32
  }
  func.func @transform_1(%arg0: i32) -> (i32, i32) {
    %c0_i32 = arith.constant 0 : i32
    %c0_i32_0 = arith.constant 0 : i32
    return %arg0, %c0_i32 : i32, i32
  }
}

</mosaic_0001>

<bundles_post_ra>
// kernel: tpu_custom_call.1
= control target key start
LH: loop header
LB: loop body
LE: loop exit
PB: predicated region body
PF: predicated region fallthrough
CT: control target
= control target key end

     0   :  { %6 = vsyncpa [#allocation3], 0  ;;  %s166_s0 = inlined_call_operand.hbm [shape: f32[16,128], index: 0, kind: input, shape index: {}]   ;;  %s167_s1 = inlined_call_operand.hbm [shape: f32[16,128], index: 1, kind: output, shape index: {}]  }
   0x1   :  { %7 = vsyncpa [#allocation4], 0  ;;  %s122_s6 = smov [#allocation2]   ;;  %s74_s10 = scalar_lea.hbm %s166_s0, 256 }
   0x2   :  { %s13_s7 = sshll.u32 %s122_s6, 4  ;;  %p75_p0 = scmp.ne.s32.totalorder %s166_s0, %s74_s10  ;;  %s14_s7 = int_to_ptr.vmem [resolvable:$true] %s13_s7 }
   0x3   :  { %p78_p1 = scmp.lt.u32.totalorder %s74_s10, %s166_s0 }
   0x5   :  { %p80_p2 = pnand %p78_p1, %p75_p0 }
   0x7   :  { %83 = shalt.err (!%p80_p2)
}
   0x8   :  { %s84_s15 = scalar_lea.vmem %s14_s7, 256  ;;  %p89_p4 = scmp.lt.s32.totalorder %s14_s7, %s14_s7 }
   0x9   :  { %p85_p3 = scmp.ne.s32.totalorder %s14_s7, %s84_s15  ;;  %p90_p5 = scmp.lt.s32.totalorder %s84_s15, %s84_s15 }
   0xb   :  { %p91_p6 = por %p90_p5, %p89_p4 }
   0xd   :  { %p92_p7 = pnand %p91_p6, %p85_p3 }
   0xf   :  { %95 = shalt.err (!%p92_p7)
}
  0x10   :  { %s123_s16 = smov 128   ;;  %s124_s17 = smov 8  }
  0x11   :  { %19 = dma.hbm_to_vmem [thread:$0]  %s166_s0, 256, %s14_s7, [#allocation3], %s123_s16, %s123_s16, %s124_s17  }
  0x12   :  { %118 = dma.done.wait [#allocation3], 256  }
  0x13   :  { %119 = vsyncadd [#allocation3], 4294967040  ;;  %v23_v0 = vld [vmem:[#allocation2] sm:$0xff]  ;;  %v24_v1 = vld [vmem:[#allocation2 + $0x8] sm:$0xff]  ;;  %s125_s0 = smov [#allocation5]  }
  0x14   :  { %25 = vmax.xlane.f32.xlu0 %v23_v0  ;;  %s50_s20 = sshll.u32 %s125_s0, 4  ;;  %s51_s20 = int_to_ptr.vmem [resolvable:$true] %s50_s20 }
  0x15   :  { %s96_s21 = scalar_lea.vmem %s51_s20, 256  ;;  %p101_p9 = scmp.lt.s32.totalorder %s51_s20, %s51_s20 }
  0x16   :  { %p97_p8 = scmp.ne.s32.totalorder %s51_s20, %s96_s21  ;;  %p102_p10 = scmp.lt.s32.totalorder %s96_s21, %s96_s21 }
  0x18   :  { %27 = vmax.xlane.f32.xlu0 %v24_v1  ;;  %p103_p11 = por %p102_p10, %p101_p9 }
  0x1a   :  { %p104_p12 = pnand %p103_p11, %p97_p8 }
  0xa1   :  { %v26_v2 = vpop.xlane.xlu0 %25 }
  0xa2   :  { %v29_v3 = vsub.f32 %v23_v0, %v26_v2 }
  0xa4   :  { %v31_v4 = vmul.f32 1.442695, %v29_v3 }
  0xa5   :  { %v28_v5 = vpop.xlane.xlu0 %27 }
  0xa6   :  { %66 = vpow2.f32 %v31_v4  ;;  %v30_v6 = vsub.f32 %v24_v1, %v28_v5 }
  0xa8   :  { %v33_v7 = vmul.f32 1.442695, %v30_v6 }
  0xaa   :  { %68 = vpow2.f32 %v33_v7 }
  0xb0   :  { %v67_v8 = vpop.eup %66 }
  0xb1   :  { %35 = vadd.xlane.f32.xlu1 %v67_v8 }
  0xb4   :  { %v69_v9 = vpop.eup %68 }
  0xb5   :  { %37 = vadd.xlane.f32.xlu1 %v69_v9 }
 0x13e   :  { %v36_v10 = vpop.xlane.xlu1 %35 }
 0x13f   :  { %70 = vrcp.f32 %v36_v10 }
 0x142   :  { %v38_v11 = vpop.xlane.xlu1 %37 }
 0x143   :  { %72 = vrcp.f32 %v38_v11 }
 0x149   :  { %v71_v12 = vpop.eup %70 }
 0x14a   :  { %v41_v13 = vmul.f32 %v71_v12, %v67_v8 }
 0x14c   :  { %43 = vst [vmem:[#allocation5] sm:$0xff] %v41_v13 }
 0x14d   :  { %v73_v14 = vpop.eup %72 }
 0x14e   :  { %v42_v15 = vmul.f32 %v73_v14, %v69_v9 }
 0x150   :  { %44 = vst [vmem:[#allocation5 + $0x8] sm:$0xff] %v42_v15 }
 0x151   :  { %107 = shalt.err (!%p104_p12)
}
 0x152   :  { %s108_s24 = scalar_lea.hbm %s167_s1, 256 }
 0x153   :  { %p109_p13 = scmp.ne.s32.totalorder %s167_s1, %s108_s24  ;;  %p112_p0 = scmp.lt.u32.totalorder %s108_s24, %s167_s1 }
 0x155   :  { %p114_p1 = pnand %p112_p0, %p109_p13 }
 0x157   :  { %117 = shalt.err (!%p114_p1)
}
 0x158   :  { %56 = dma.vmem_to_hbm [thread:$0]  %s51_s20, 256, %s167_s1, [#allocation4], %s123_s16, %s123_s16, %s124_s17  }
 0x159   :  { %120 = dma.done.wait [#allocation4], 256  }
 0x15a   :  { %121 = vsyncadd [#allocation4], 4294967040 }
 0x15b   :  { %60 = vsyncpa [#allocation3], 1 }
 0x15c   :  { %61 = vsyncpa [#allocation4], 1 }

</bundles_post_ra>
